<compile_context>
chip_gen: v7x
topology: tpu7x:2x2x1
jax: 0.10.0
libtpu: 0.0.40
codegen_flags: <defaults>
</compile_context>

<pallas_src>
import math

import jax
import jax.numpy as jnp
from jax.experimental import pallas as pl
from jax.experimental.pallas import tpu as pltpu


def _vmem_bytes(C, H_pad, W, tile):
    """Rough per-step VMEM footprint (bytes) for a given output tile width."""
    img = 2 * C * H_pad * W * 2            # bf16 resident image block, double-buffered
    coords = 2 * 2 * tile * 4              # px/py row vectors, double-buffered
    wx = W * tile * (4 + 2)                # f32 tent build + bf16 copy for the MXU
    wy = H_pad * tile * 4                  # f32 tent
    t = H_pad * tile * 4                   # per-channel matmul temp (one live at a time)
    out = 2 * C * tile * 4                 # double-buffered output block
    misc = 8 * tile * 4                    # sx/sy and friends
    return img + coords + wx + wy + t + out + misc


def _pick_tile(HW, C, H_pad, W, budget=12 * 1024 * 1024):
    """Lane-dense (multiple-of-128) output tile width, VMEM-budget aware."""
    hw128 = max(128, -(-HW // 128) * 128)
    cands = [t for t in (1024, 896, 768, 640, 512, 384, 256, 128) if t <= hw128]
    cands = [t for t in cands if _vmem_bytes(C, H_pad, W, t) <= budget] or [128]
    exact = [t for t in cands if HW % t == 0]     # prefer no padded lanes
    pool = exact if exact else cands
    tile = pool[0]
    for t in pool:                                 # prefer >=2 grid steps (v7x has 2 TCs)
        if -(-HW // t) >= 2:
            tile = t
            break
    return tile


def _make_rst_kernel(C, H_pad, W):
    def kernel(params_ref, px_ref, py_ref, img_ref, out_ref):
        # params_ref (SMEM f32[8]): inverse affine (dst pixel -> src pixel)
        #   src_x = a*dx + b*dy + c ; src_y = d*dx + e*dy + f
        a = params_ref[0]
        b = params_ref[1]
        c = params_ref[2]
        d = params_ref[3]
        e = params_ref[4]
        f = params_ref[5]

        # output-pixel coordinates for this tile: (1, TILE) row vectors
        px = px_ref[...]
        py = py_ref[...]

        # source coordinate of every output pixel in the tile (O(TILE) work)
        sx = a * px + b * py + c                               # (1, TILE)
        sy = d * px + e * py + f                               # (1, TILE)

        # separable bilinear tent weights; out-of-range sources get zero weight
        # from every real pixel => zero-padding semantics (padded image rows are
        # zero, so they contribute nothing regardless of weight).
        qx = jax.lax.broadcasted_iota(jnp.int32, (W, 1), 0).astype(jnp.float32)
        qy = jax.lax.broadcasted_iota(jnp.int32, (H_pad, 1), 0).astype(jnp.float32)
        wx = jnp.maximum(0.0, 1.0 - jnp.abs(sx - qx))          # (W, TILE) f32
        wy = jnp.maximum(0.0, 1.0 - jnp.abs(sy - qy))          # (H_pad, TILE) f32
        wx_bf = wx.astype(jnp.bfloat16)                        # MXU operand

        # per-channel: MXU qx contraction fused with the VPU qy reduce — the
        # only live temp is (H_pad, TILE), never (C*H_pad, TILE).
        for ci in range(C):
            img_c = img_ref[pl.ds(ci * H_pad, H_pad), :]       # (H_pad, W) bf16
            t_c = jnp.dot(img_c, wx_bf,
                          preferred_element_type=jnp.float32)  # (H_pad, TILE) f32
            out_ref[pl.ds(ci, 1), :] = jnp.sum(t_c * wy, axis=0, keepdims=True)

    return kernel


def random_rst_warp(img_chw, key, degree=45.0, scale=(0.75, 1.5)):
    """Random rotation (+/- degree) and isotropic scale about the image centre,
    bilinear interpolation, zero padding.  img_chw: (C, H, W)."""
    C, H, W = img_chw.shape
    HW = H * W
    k1, k2 = jax.random.split(key)

    # p = 1.0 -> always applied; same_on_batch irrelevant for a single image.
    # (RandomAffine with only degrees+scale: no translation component.)
    theta_deg = jax.random.uniform(k1, (), minval=-degree, maxval=degree)
    s = jax.random.uniform(k2, (), minval=scale[0], maxval=scale[1])

    theta = theta_deg * (math.pi / 180.0)
    cos_t = jnp.cos(theta)
    sin_t = jnp.sin(theta)
    cx = (W - 1) / 2.0
    cy = (H - 1) / 2.0

    # forward: dst = s * R(theta) @ (src - centre) + centre
    # sampler needs the inverse: src = (1/s) * R(-theta) @ (dst - centre) + centre
    a = cos_t / s
    b = sin_t / s
    d = -sin_t / s
    e = cos_t / s
    c = cx - a * cx - b * cy
    f = cy - d * cx - e * cy
    params = jnp.stack(
        [a, b, c, d, e, f, jnp.zeros(()), jnp.zeros(())]
    ).astype(jnp.float32)

    # Pad H (not C) to a multiple of 8 so per-channel slice boundaries and the
    # MXU M dimension stay sublane-aligned; usually a no-op (H % 8 == 0).
    H_pad = ((H + 7) // 8) * 8
    img = img_chw.astype(jnp.bfloat16)                 # bf16 MXU operand
    if H_pad != H:
        img = jnp.pad(img, ((0, 0), (0, H_pad - H), (0, 0)))
    img2 = img.reshape(C * H_pad, W)

    TILE = _pick_tile(HW, C, H_pad, W)
    HW_pad = pl.cdiv(HW, TILE) * TILE                  # lane-dense padded flat axis
    grid = (HW_pad // TILE,)

    # O(HW) coordinate row vectors, precomputed outside the kernel.
    p_idx = jnp.arange(HW_pad, dtype=jnp.int32)
    px_vec = (p_idx % W).astype(jnp.float32).reshape(1, HW_pad)
    py_vec = (p_idx // W).astype(jnp.float32).reshape(1, HW_pad)

    est = _vmem_bytes(C, H_pad, W, TILE)
    vmem_limit = int(min(48 * 1024 * 1024, max(32 * 1024 * 1024, 2 * est)))

    flops = int(2 * C * H_pad * W * HW_pad             # MXU qx contraction
                + 3 * C * H_pad * HW_pad               # VPU qy mult + reduce
                + 8 * (H_pad + W) * HW_pad)            # tent-weight build
    bytes_accessed = int(2 * C * H_pad * W + 4 * C * HW_pad + 2 * 4 * HW_pad + 32)

    out_flat = pl.pallas_call(
        _make_rst_kernel(C, H_pad, W),
        out_shape=jax.ShapeDtypeStruct((C, HW_pad), jnp.float32),
        grid=grid,
        in_specs=[
            pl.BlockSpec(memory_space=pltpu.MemorySpace.SMEM),   # affine params
            pl.BlockSpec((1, TILE), lambda j: (0, j)),           # px row vector
            pl.BlockSpec((1, TILE), lambda j: (0, j)),           # py row vector
            pl.BlockSpec((C * H_pad, W), lambda j: (0, 0)),      # image (resident)
        ],
        out_specs=pl.BlockSpec((C, TILE), lambda j: (0, j)),
        compiler_params=pltpu.CompilerParams(
            dimension_semantics=("parallel",),
            vmem_limit_bytes=vmem_limit),
        cost_estimate=pl.CostEstimate(
            flops=flops, transcendentals=0, bytes_accessed=bytes_accessed),
    )(params, px_vec, py_vec, img2)

    return out_flat[:, :HW].reshape(C, H, W).astype(img_chw.dtype)


def random_rst_forward(noised_and_cover, key, degree=45.0, scale=(0.75, 1.5)):
    """Mirror of RandomRST.forward: warps element 0, passes the rest through."""
    noised_image = noised_and_cover[0]
    _, height, width = noised_image.shape  # CHW, matches the PyTorch module
    warped = random_rst_warp(noised_image, key, degree=degree, scale=scale)
    out = list(noised_and_cover)
    out[0] = warped
    return out


if __name__ == "__main__":
    key = jax.random.PRNGKey(0)
    k_img, k_cov, k_aug = jax.random.split(key, 3)

    C, H, W = 4, 16, 16
    noised_image = jax.random.normal(k_img, (C, H, W), dtype=jnp.float32)
    cover_image = jax.random.normal(k_cov, (C, H, W), dtype=jnp.float32)

    # Actual module semantics: random rotation + scale on element 0.
    result = random_rst_forward([noised_image, cover_image], k_aug)
    jax.block_until_ready(result[0])
    jax.block_until_ready(result[1])
    assert result[0].shape == (C, H, W)
    assert result[0].dtype == jnp.float32
    assert bool(jnp.all(jnp.isfinite(result[0])))

    # Sanity: identity transform (0 deg, unit scale) reproduces the input
    # (tolerance loosened to cover the bf16 cast of the MXU operands).
    ident = random_rst_warp(noised_image, k_aug, degree=0.0, scale=(1.0, 1.0))
    jax.block_until_ready(ident)
    assert bool(jnp.allclose(ident, noised_image, rtol=1e-2, atol=1e-2))

    # Multi-tile parallel grid, non-square image (HW=768 -> TILE=384, 2 steps).
    H2, W2 = 24, 32
    img_b = jax.random.normal(k_img, (C, H2, W2), dtype=jnp.float32)
    ident_b = random_rst_warp(img_b, k_aug, degree=0.0, scale=(1.0, 1.0))
    jax.block_until_ready(ident_b)
    assert ident_b.shape == (C, H2, W2)
    assert bool(jnp.allclose(ident_b, img_b, rtol=1e-2, atol=1e-2))

    # H not a multiple of 8 and HW not a multiple of 128: exercises H padding
    # and the padded lane-dense output axis.
    C3, H3, W3 = 3, 12, 20
    img_c = jax.random.normal(k_cov, (C3, H3, W3), dtype=jnp.float32)
    ident_c = random_rst_warp(img_c, k_aug, degree=0.0, scale=(1.0, 1.0))
    jax.block_until_ready(ident_c)
    assert ident_c.shape == (C3, H3, W3)
    assert bool(jnp.allclose(ident_c, img_c, rtol=1e-2, atol=1e-2))

    print("KERNEL_OK")
</pallas_src>

<mosaic_0001>
module attributes {stable_mosaic.version = 11 : i64} {
  func.func @kernel(%arg0: i32, %arg1: memref<8xf32, #tpu.memory_space<smem>>, %arg2: memref<1x128xf32, #tpu.memory_space<vmem>>, %arg3: memref<1x128xf32, #tpu.memory_space<vmem>>, %arg4: memref<64x16xbf16, #tpu.memory_space<vmem>>, %arg5: memref<4x128xf32, #tpu.memory_space<vmem>>) attributes {dimension_semantics = [#tpu.dimension_semantics<parallel>], iteration_bounds = array<i64: 2>, scalar_prefetch = 0 : i64, scratch_operands = 0 : i64, tpu.core_type = #tpu.core_type<tc>, window_params = [{transform_indices = @transform_0, window_bounds = array<i64: 8>}, {transform_indices = @transform_1, window_bounds = array<i64: 1, 128>}, {transform_indices = @transform_2, window_bounds = array<i64: 1, 128>}, {pipeline_mode = #tpu.pipeline_mode<synchronous>, transform_indices = @transform_3, window_bounds = array<i64: 64, 16>}, {transform_indices = @transform_4, window_bounds = array<i64: 4, 128>}]} {
    %c0 = arith.constant 0 : index
    %0 = memref.load %arg1[%c0] : memref<8xf32, #tpu.memory_space<smem>>
    %c1 = arith.constant 1 : index
    %1 = memref.load %arg1[%c1] : memref<8xf32, #tpu.memory_space<smem>>
    %c2 = arith.constant 2 : index
    %2 = memref.load %arg1[%c2] : memref<8xf32, #tpu.memory_space<smem>>
    %c3 = arith.constant 3 : index
    %3 = memref.load %arg1[%c3] : memref<8xf32, #tpu.memory_space<smem>>
    %c4 = arith.constant 4 : index
    %4 = memref.load %arg1[%c4] : memref<8xf32, #tpu.memory_space<smem>>
    %c5 = arith.constant 5 : index
    %5 = memref.load %arg1[%c5] : memref<8xf32, #tpu.memory_space<smem>>
    %c0_0 = arith.constant 0 : index
    %c0_1 = arith.constant 0 : index
    %6 = vector.load %arg2[%c0_0, %c0_1] : memref<1x128xf32, #tpu.memory_space<vmem>>, vector<1x128xf32>
    %c0_2 = arith.constant 0 : index
    %c0_3 = arith.constant 0 : index
    %7 = vector.load %arg3[%c0_2, %c0_3] : memref<1x128xf32, #tpu.memory_space<vmem>>, vector<1x128xf32>
    %8 = vector.broadcast %0 : f32 to vector<1x128xf32>
    %9 = arith.mulf %8, %6 : vector<1x128xf32>
    %10 = vector.broadcast %1 : f32 to vector<1x128xf32>
    %11 = arith.mulf %10, %7 : vector<1x128xf32>
    %12 = arith.addf %9, %11 : vector<1x128xf32>
    %13 = vector.broadcast %2 : f32 to vector<1x128xf32>
    %14 = arith.addf %12, %13 : vector<1x128xf32>
    %15 = vector.broadcast %3 : f32 to vector<1x128xf32>
    %16 = arith.mulf %15, %6 : vector<1x128xf32>
    %17 = vector.broadcast %4 : f32 to vector<1x128xf32>
    %18 = arith.mulf %17, %7 : vector<1x128xf32>
    %19 = arith.addf %16, %18 : vector<1x128xf32>
    %20 = vector.broadcast %5 : f32 to vector<1x128xf32>
    %21 = arith.addf %19, %20 : vector<1x128xf32>
    %22 = tpu.iota {dimensions = array<i32: 0>} : vector<16x1xi32>
    %23 = arith.sitofp %22 : vector<16x1xi32> to vector<16x1xf32>
    %24 = tpu.iota {dimensions = array<i32: 0>} : vector<16x1xi32>
    %25 = arith.sitofp %24 : vector<16x1xi32> to vector<16x1xf32>
    %26 = vector.broadcast %14 : vector<1x128xf32> to vector<16x128xf32>
    %27 = vector.broadcast %23 : vector<16x1xf32> to vector<16x128xf32>
    %28 = arith.subf %26, %27 : vector<16x128xf32>
    %29 = math.absf %28 : vector<16x128xf32>
    %cst = arith.constant 1.000000e+00 : f32
    %30 = vector.broadcast %cst : f32 to vector<16x128xf32>
    %31 = arith.subf %30, %29 : vector<16x128xf32>
    %cst_4 = arith.constant 0.000000e+00 : f32
    %32 = vector.broadcast %cst_4 : f32 to vector<16x128xf32>
    %33 = arith.maximumf %32, %31 : vector<16x128xf32>
    %34 = vector.broadcast %21 : vector<1x128xf32> to vector<16x128xf32>
    %35 = vector.broadcast %25 : vector<16x1xf32> to vector<16x128xf32>
    %36 = arith.subf %34, %35 : vector<16x128xf32>
    %37 = math.absf %36 : vector<16x128xf32>
    %cst_5 = arith.constant 1.000000e+00 : f32
    %38 = vector.broadcast %cst_5 : f32 to vector<16x128xf32>
    %39 = arith.subf %38, %37 : vector<16x128xf32>
    %cst_6 = arith.constant 0.000000e+00 : f32
    %40 = vector.broadcast %cst_6 : f32 to vector<16x128xf32>
    %41 = arith.maximumf %40, %39 : vector<16x128xf32>
    %42 = arith.truncf %33 : vector<16x128xf32> to vector<16x128xbf16>
    %c0_7 = arith.constant 0 : index
    %c0_8 = arith.constant 0 : index
    %43 = vector.load %arg4[%c0_7, %c0_8] : memref<64x16xbf16, #tpu.memory_space<vmem>>, vector<16x16xbf16>
    %cst_9 = arith.constant dense<0.000000e+00> : vector<16x128xf32>
    %44 = tpu.matmul %43, %42, %cst_9 {dimension_numbers = #tpu.dot_dimension_numbers<[1], [0], [0], [1], [0, 0, 1, 1], [], []>} : vector<16x16xbf16>, vector<16x128xbf16>, vector<16x128xf32> -> vector<16x128xf32>
    %45 = arith.mulf %44, %41 : vector<16x128xf32>
    %cst_10 = arith.constant dense<0.000000e+00> : vector<128xf32>
    %46 = vector.multi_reduction <add>, %45, %cst_10 [0] : vector<16x128xf32> to vector<128xf32>
    %47 = vector.shape_cast %46 : vector<128xf32> to vector<1x128xf32>
    %c0_11 = arith.constant 0 : index
    %c0_12 = arith.constant 0 : index
    %48 = vector.load %arg5[%c0_11, %c0_12] : memref<4x128xf32, #tpu.memory_space<vmem>>, vector<1x128xf32>
    tpu.vector_store %arg5[%c0_11, %c0_12], %47 {strides = array<i32>} : memref<4x128xf32, #tpu.memory_space<vmem>>, vector<1x128xf32>,
    %c16 = arith.constant 16 : index
    %c0_13 = arith.constant 0 : index
    %49 = vector.load %arg4[%c16, %c0_13] : memref<64x16xbf16, #tpu.memory_space<vmem>>, vector<16x16xbf16>
    %cst_14 = arith.constant dense<0.000000e+00> : vector<16x128xf32>
    %50 = tpu.matmul %49, %42, %cst_14 {dimension_numbers = #tpu.dot_dimension_numbers<[1], [0], [0], [1], [0, 0, 1, 1], [], []>} : vector<16x16xbf16>, vector<16x128xbf16>, vector<16x128xf32> -> vector<16x128xf32>
    %51 = arith.mulf %50, %41 : vector<16x128xf32>
    %cst_15 = arith.constant dense<0.000000e+00> : vector<128xf32>
    %52 = vector.multi_reduction <add>, %51, %cst_15 [0] : vector<16x128xf32> to vector<128xf32>
    %53 = vector.shape_cast %52 : vector<128xf32> to vector<1x128xf32>
    %c1_16 = arith.constant 1 : index
    %c0_17 = arith.constant 0 : index
    %54 = vector.load %arg5[%c1_16, %c0_17] : memref<4x128xf32, #tpu.memory_space<vmem>>, vector<1x128xf32>
    tpu.vector_store %arg5[%c1_16, %c0_17], %53 {strides = array<i32>} : memref<4x128xf32, #tpu.memory_space<vmem>>, vector<1x128xf32>,
    %c32 = arith.constant 32 : index
    %c0_18 = arith.constant 0 : index
    %55 = vector.load %arg4[%c32, %c0_18] : memref<64x16xbf16, #tpu.memory_space<vmem>>, vector<16x16xbf16>
    %cst_19 = arith.constant dense<0.000000e+00> : vector<16x128xf32>
    %56 = tpu.matmul %55, %42, %cst_19 {dimension_numbers = #tpu.dot_dimension_numbers<[1], [0], [0], [1], [0, 0, 1, 1], [], []>} : vector<16x16xbf16>, vector<16x128xbf16>, vector<16x128xf32> -> vector<16x128xf32>
    %57 = arith.mulf %56, %41 : vector<16x128xf32>
    %cst_20 = arith.constant dense<0.000000e+00> : vector<128xf32>
    %58 = vector.multi_reduction <add>, %57, %cst_20 [0] : vector<16x128xf32> to vector<128xf32>
    %59 = vector.shape_cast %58 : vector<128xf32> to vector<1x128xf32>
    %c2_21 = arith.constant 2 : index
    %c0_22 = arith.constant 0 : index
    %60 = vector.load %arg5[%c2_21, %c0_22] : memref<4x128xf32, #tpu.memory_space<vmem>>, vector<1x128xf32>
    tpu.vector_store %arg5[%c2_21, %c0_22], %59 {strides = array<i32>} : memref<4x128xf32, #tpu.memory_space<vmem>>, vector<1x128xf32>,
    %c48 = arith.constant 48 : index
    %c0_23 = arith.constant 0 : index
    %61 = vector.load %arg4[%c48, %c0_23] : memref<64x16xbf16, #tpu.memory_space<vmem>>, vector<16x16xbf16>
    %cst_24 = arith.constant dense<0.000000e+00> : vector<16x128xf32>
    %62 = tpu.matmul %61, %42, %cst_24 {dimension_numbers = #tpu.dot_dimension_numbers<[1], [0], [0], [1], [0, 0, 1, 1], [], []>} : vector<16x16xbf16>, vector<16x128xbf16>, vector<16x128xf32> -> vector<16x128xf32>
    %63 = arith.mulf %62, %41 : vector<16x128xf32>
    %cst_25 = arith.constant dense<0.000000e+00> : vector<128xf32>
    %64 = vector.multi_reduction <add>, %63, %cst_25 [0] : vector<16x128xf32> to vector<128xf32>
    %65 = vector.shape_cast %64 : vector<128xf32> to vector<1x128xf32>
    %c3_26 = arith.constant 3 : index
    %c0_27 = arith.constant 0 : index
    %66 = vector.load %arg5[%c3_26, %c0_27] : memref<4x128xf32, #tpu.memory_space<vmem>>, vector<1x128xf32>
    tpu.vector_store %arg5[%c3_26, %c0_27], %65 {strides = array<i32>} : memref<4x128xf32, #tpu.memory_space<vmem>>, vector<1x128xf32>,
    return
  }
  func.func @transform_0(%arg0: i32) -> i32 {
    %c0_i32 = arith.constant 0 : i32
    %c0_i32_0 = arith.constant 0 : i32
    return %c0_i32 : i32
  }
  func.func @transform_1(%arg0: i32) -> (i32, i32) {
    %c0_i32 = arith.constant 0 : i32
    %c0_i32_0 = arith.constant 0 : i32
    return %c0_i32, %arg0 : i32, i32
  }
  func.func @transform_2(%arg0: i32) -> (i32, i32) {
    %c0_i32 = arith.constant 0 : i32
    %c0_i32_0 = arith.constant 0 : i32
    return %c0_i32, %arg0 : i32, i32
  }
  func.func @transform_3(%arg0: i32) -> (i32, i32) {
    %c0_i32 = arith.constant 0 : i32
    %c0_i32_0 = arith.constant 0 : i32
    %c0_i32_1 = arith.constant 0 : i32
    return %c0_i32, %c0_i32_0 : i32, i32
  }
  func.func @transform_4(%arg0: i32) -> (i32, i32) {
    %c0_i32 = arith.constant 0 : i32
    %c0_i32_0 = arith.constant 0 : i32
    return %c0_i32, %arg0 : i32, i32
  }
}

</mosaic_0001>

<bundles_post_ra>
// kernel: tpu_custom_call.1
= control target key start
LH: loop header
LB: loop body
LE: loop exit
PB: predicated region body
PF: predicated region fallthrough
CT: control target
= control target key end

     0   :  { %9 = vsyncpa [#allocation4], 0  ;;  %s976_s0 = inlined_call_operand.vmem [shape: f32[8], index: 0, kind: input, shape index: {}]   ;;  %s977_s1 = inlined_call_operand.vmem [shape: f32[1,256], index: 1, kind: input, shape index: {}]   ;;  %s978_s2 = inlined_call_operand.vmem [shape: f32[1,256], index: 2, kind: input, shape index: {}]   ;;  %s979_s3 = inlined_call_operand.vmem [shape: bf16[64,16], index: 3, kind: input, shape index: {}]   ;;  %s980_s4 = inlined_call_operand.hbm [shape: f32[4,256], index: 4, kind: output, shape index: {}]  }
   0x1   :  { %10 = vsyncpa [#allocation3], 0 }
   0x2   :  { %12 = vsyncpa [#allocation3 + $0x1], 0  ;;  %s835_s15 = smov 0   ;;  %s837_s16 = smov 0  }
   0x3   :  { %s839_s17 = smov 0   ;;  %s841_s18 = smov 0  }
   0x4 LB: > { %s856_s19 = sadd.s32 4294967295, %s804_s18   ;;  %s611_s20 = sadd.s32 4294967294, %s804_s18   ;;  %s804_s18 = sphi %s841_s18, %s987_s18   ;;  %s800_s17 = sphi %s839_s17, %s986_s17   ;;  %s796_s16 = sphi %s837_s16, %s985_s16   ;;  %s792_s15 = sphi %s835_s15, %s984_s15  }
   0x5   : > { %s860_s21 = sadd.s32 1, %s804_s18   ;;  %s119_s22 = sadd.s32 1, %s800_s17 }
   0x6   : > { %s116_s23 = ssub.s32 %s804_s18, %s860_s21  ;;  %p129_p0 = scmp.ne.s32.totalorder %s800_s17, %s796_s16 }
   0x7   : > { %p117_p1 = scmp.eq.s32.totalorder %s116_s23, 0  ;;  %p130_p2 = scmp.eq.s32.totalorder %s856_s19, 1 }
   0x8   : > { %p135_p3 = scmp.ne.s32.totalorder %s796_s16, %s792_s15  ;;  %p136_p4 = scmp.eq.s32.totalorder %s611_s20, 1 }
   0x9   : > { %s871_s24 = scalar_select %p117_p1, %s800_s17, %s119_s22  }
   0xa   : > { %p873_p5 = por %p130_p2, %p129_p0  ;;  %p877_p6 = por %p136_p4, %p135_p3 }
   0xb   : > { %p612_p7 = scmp.ge.s32.totalorder %s804_s18, 1  ;;  %p143_p8 = scmp.lt.s32.totalorder %s804_s18, 3 }
   0xc   : > { %p681_p9 = scmp.eq.s32.totalorder %s856_s19, 0  ;;  %s156_s30 = sshll.u32 %s976_s0, 4  ;;  %s157_s30 = int_to_ptr.vmem [resolvable:$true] %s156_s30 }
   0xd   : > { %p884_p10 = pnand %p612_p7, %p143_p8  ;;  %s723_s5 = scalar_lea.vmem %s157_s30, 16 }
   0xe   : > { %p724_p13 = scmp.ne.s32.totalorder %s157_s30, %s723_s5  ;;  %p731_p3 = scmp.lt.s32.totalorder %s157_s30, %s157_s30 }
   0xf   : > { %p673_p11 = pneg %p884_p10  ;;  %p732_p4 = scmp.lt.s32.totalorder %s723_s5, %s723_s5 }
  0x11   : > { %p674_p12 = pnand %p681_p9, %p673_p11  ;;  %p733_p7 = por %p732_p4, %p731_p3 }
  0x13   : > { %p725_p0 = pneg %p674_p12 }
  0x15   : > { %p726_p1 = pnand %p725_p0, %p724_p13 }
  0x17   : > { %p727_p2 = pneg %p726_p1 }
  0x19   : > { %p734_p8 = pnand %p733_p7, %p727_p2 }
  0x1b   : > { %737 = shalt.err (!%p734_p8)
}
  0x1c   : > { %s806_s6 = smov [#allocation2]   ;;  %184 = sbr.rel (%p884_p10) target bundleno = 319 (0x13f), region = 36 }
  0x1d   : > { %676 = dma.vmem_to_smem (!%p674_p12), %s157_s30, 16, %s806_s6, [#allocation4]  }
  0x23   : > { %783 = dma.done.wait (%p681_p9), [#allocation4], 16  }
  0x24   : > { %785 = vsyncadd (%p681_p9), [#allocation4], 4294967280 }
  0x25   : > { %190 = sfence }
  0x26   : > { %p212_p11 = scmp.lt.s32.totalorder %s856_s19, 1  ;;  %s219_s7 = sld [smem:[#allocation2]]  ;;  %v241_v0 = vlaneseq  ;;  %v807_v1 = vmov 0.0   ;;  %vm808_vm0 = vmmov 0   ;;  %v719_v35 = vld [vmem:[%s979_s3] sm:$0xff]   ;;  %v720_v36 = vld [vmem:[%s979_s3 + $0x8] sm:$0xff]  }
  0x27   : > { %643 = vmatprep.subr.bf16.mxu0 %v807_v1  ;;  %649 = vmatprep.subr.bf16.mxu1 %v807_v1  ;;  %s618_s8 = sld [smem:[#allocation2 + $0x1]]  ;;  %s619_s9 = sld [smem:[#allocation2 + $0x2]]  ;;  %vm282_vm1 = vcmask 130048   ;;  %v721_v37 = vld [vmem:[%s979_s3 + $0x10] sm:$0xff]   ;;  %v722_v38 = vld [vmem:[%s979_s3 + $0x18] sm:$0xff]  }
  0x28   : > { %s213_s10 = scalar_select %p212_p11, %s856_s19, 1  ;;  %645 = vmatprep.mubr.msk.bf16.mxu0 %vm808_vm0, %v807_v1  ;;  %651 = vmatprep.mubr.msk.bf16.mxu1 %vm808_vm0, %v807_v1  ;;  %v242_v2 = vshrl.u32 %v241_v0, 7 }
  0x29   : > { %s620_s23 = sld [smem:[#allocation2 + $0x3]]  ;;  %s621_s27 = sld [smem:[#allocation2 + $0x4]] }
  0x2a   : > { %s214_s13 = scalar_lea.vmem %s977_s1, %s213_s10  ;;  %s217_s22 = scalar_lea.vmem %s978_s2, %s213_s10  ;;  %v243_v9 = vadd.s32 8, %v242_v2  ;;  %v249_v12 = vsub.s32 0, %v242_v2  ;;  %v244_v13 = vcvt.s32.f32 %v242_v2 }
  0x2b   : > { %v225_v3 = vld [vmem:[%s214_s13] sm:$0x1]  ;;  %s622_s28 = sld [smem:[#allocation2 + $0x5]]  ;;  %s209_s11 = sand.u32 1, %s796_s16  }
  0x2c   : > { %v226_v4 = vld [vmem:[%s217_s22] sm:$0x1]  ;;  %v227_v5 = vstv %s219_s7  ;;  %v245_v15 = vcvt.s32.f32 %v243_v9  ;;  %s617_s12 = sshll.u32 %s209_s11, 2  ;;  %s632_s14 = sshll.u32 %s856_s19, 6 }
  0x2d   : > { %v228_v6 = vmul.f32 %v227_v5, %v225_v3  ;;  %v229_v7 = vstv %s618_s8  ;;  %v232_v10 = vstv %s619_s9  ;;  %s211_s13 = scalar_lea.vmem [#allocation5], %s617_s12  ;;  %s809_s29 = smov [#allocation5]  }
  0x2e   : > { %v230_v8 = vmul.f32 %v229_v7, %v226_v4  ;;  %s534_s20 = sshll.u32 %s211_s13, 4  ;;  %s742_s30 = sshll.u32 %s809_s29, 4  ;;  %s934_s20 = int_to_ptr.vmem [resolvable:$true] %s534_s20  ;;  %s743_s30 = int_to_ptr.vmem [resolvable:$false] %s742_s30 }
  0x2f   : > { %v234_v16 = vstv %s620_s23  ;;  %v236_v17 = vstv %s621_s27  ;;  %s932_s27 = scalar_lea.hbm %s980_s4, %s632_s14  ;;  %s738_s19 = scalar_lea.vmem %s934_s20, 64 }
  0x30   : > { %v231_v11 = vadd.f32 %v230_v8, %v228_v6  ;;  %v235_v18 = vmul.f32 %v234_v16, %v225_v3  ;;  %v237_v19 = vmul.f32 %v236_v17, %v226_v4  ;;  %p739_p9 = scmp.ne.s32.totalorder %s934_s20, %s738_s19  ;;  %s744_s5 = scalar_lea.vmem %s743_s30, 128 }
  0x31   : > { %v239_v21 = vstv %s622_s28  ;;  %s521_s28 = scalar_lea.sflag [#allocation3], %s209_s11  ;;  %p745_p13 = scmp.lt.s32.totalorder %s934_s20, %s743_s30 }
  0x32   : > { %v233_v14 = vadd.f32 %v232_v10, %v231_v11  ;;  %v238_v22 = vadd.f32 %v237_v19, %v235_v18  ;;  %p740_p10 = pnand %p739_p9, %p873_p5  ;;  %p746_p0 = scmp.lt.s32.totalorder %s744_s5, %s738_s19 }
  0x34   : > { %v250_v20 = vrot.slane %v233_v14, %v249_v12  ;;  %v240_v25 = vadd.f32 %v239_v21, %v238_v22  ;;  %p741_p12 = pneg %p740_p10  ;;  %p747_p1 = por %p746_p0, %p745_p13 }
  0x36   : > { %v252_v23 = vsub.f32 %v250_v20, %v244_v13  ;;  %v253_v24 = vsub.f32 %v250_v20, %v245_v15  ;;  %v264_v28 = vrot.slane %v240_v25, %v249_v12  ;;  %p748_p2 = pnand %p747_p1, %p741_p12 }
  0x38   : > { %v254_v26 = vand.u32 2147483647, %v252_v23  ;;  %v255_v27 = vand.u32 2147483647, %v253_v24  ;;  %v266_v31 = vsub.f32 %v264_v28, %v244_v13  ;;  %v267_v39 = vsub.f32 %v264_v28, %v245_v15 }
  0x3a   : > { %v256_v29 = vsub.f32 1.0, %v254_v26  ;;  %v257_v30 = vsub.f32 1.0, %v255_v27  ;;  %v268_v40 = vand.u32 2147483647, %v266_v31  ;;  %v269_v41 = vand.u32 2147483647, %v267_v39 }
  0x3c   : > { %v258_v32 = vmax.f32 %v256_v29, 0.0  ;;  %v259_v33 = vmax.f32 %v257_v30, 0.0  ;;  %v270_v42 = vsub.f32 1.0, %v268_v40  ;;  %v271_v43 = vsub.f32 1.0, %v269_v41 }
  0x3e   : > { %v274_v34 = vpack.c.bf16 %v259_v33, %v258_v32  ;;  %v272_v44 = vmax.f32 %v270_v42, 0.0  ;;  %v273_v45 = vmax.f32 %v271_v43, 0.0 }
  0x40   : > { %644 = vmatpush3.bf16.msra.mxu0 %v274_v34  ;;  %650 = vmatpush3.bf16.msra.mxu1 %v274_v34 }
  0x41   : > { %655 = vmatprep.subr.bf16.mxu0 %v807_v1  ;;  %661 = vmatprep.subr.bf16.mxu1 %v807_v1 }
  0x43   : > { %646 = vmatmul.mubr.msk.bf16.vlgmr.msra.gmra.mrb[0].mxu0 %vm282_vm1, %v719_v35  ;;  %652 = vmatmul.mubr.msk.bf16.vlgmr.msra.gmra.mrb[0].mxu1 %vm282_vm1, %v720_v36 }
  0x44   : > { %656 = vmatpush3.bf16.msra.mxu0 %v274_v34  ;;  %662 = vmatpush3.bf16.msra.mxu1 %v274_v34 }
  0x45   : > { %657 = vmatprep.mubr.msk.bf16.mxu0 %vm808_vm0, %v807_v1  ;;  %663 = vmatprep.mubr.msk.bf16.mxu1 %vm808_vm0, %v807_v1 }
  0x4b   : > { %658 = vmatmul.mubr.msk.bf16.vlgmr.msra.gmra.mrb[4].mxu0 %vm282_vm1, %v721_v37  ;;  %664 = vmatmul.mubr.msk.bf16.vlgmr.msra.gmra.mrb[4].mxu1 %vm282_vm1, %v722_v38 }
 0x116   : > { %v320_v46 = vpop.f32.mrb[0].mxu0  ;;  %v381_v47 = vpop.f32.mrb[0].mxu1 }
 0x117   : > { %v327_v48 = vmul.f32 %v320_v46, %v272_v44  ;;  %v388_v49 = vmul.f32 %v381_v47, %v272_v44  ;;  %v647_v50 = vpop.f32.mrb[1].mxu0  ;;  %v653_v51 = vpop.f32.mrb[1].mxu1 }
 0x118   : > { %v323_v52 = vpop.f32.mrb[2].mxu0  ;;  %v384_v53 = vpop.f32.mrb[2].mxu1 }
 0x119   : > { %v328_v54 = vmul.f32 %v323_v52, %v273_v45  ;;  %v389_v55 = vmul.f32 %v384_v53, %v273_v45  ;;  %v648_v56 = vpop.f32.mrb[3].mxu0  ;;  %v654_v57 = vpop.f32.mrb[3].mxu1 }
 0x11b   : > { %v329_v58 = vadd.f32 %v328_v54, %v327_v48  ;;  %v390_v59 = vadd.f32 %v389_v55, %v388_v49 }
 0x11d   : > { %v330_v60 = vrot.slane %v329_v58, 4  ;;  %v391_v61 = vrot.slane %v390_v59, 4 }
 0x11e   : > { %v442_v62 = vpop.f32.mrb[4].mxu0  ;;  %v503_v63 = vpop.f32.mrb[4].mxu1 }
 0x11f   : > { %v331_v0 = vadd.f32 %v330_v60, %v329_v58  ;;  %v392_v1 = vadd.f32 %v391_v61, %v390_v59  ;;  %v449_v2 = vmul.f32 %v442_v62, %v272_v44  ;;  %v510_v3 = vmul.f32 %v503_v63, %v272_v44  ;;  %v659_v4 = vpop.f32.mrb[5].mxu0  ;;  %v665_v5 = vpop.f32.mrb[5].mxu1 }
 0x120   : > { %v445_v6 = vpop.f32.mrb[6].mxu0  ;;  %v506_v7 = vpop.f32.mrb[6].mxu1 }
 0x121   : > { %v332_v8 = vrot.slane %v331_v0, 2  ;;  %v393_v9 = vrot.slane %v392_v1, 2  ;;  %v450_v10 = vmul.f32 %v445_v6, %v273_v45  ;;  %v511_v11 = vmul.f32 %v506_v7, %v273_v45  ;;  %v660_v12 = vpop.f32.mrb[7].mxu0  ;;  %v666_v13 = vpop.f32.mrb[7].mxu1 }
 0x123   : > { %v333_v14 = vadd.f32 %v332_v8, %v331_v0  ;;  %v394_v15 = vadd.f32 %v393_v9, %v392_v1  ;;  %v451_v16 = vadd.f32 %v450_v10, %v449_v2  ;;  %v512_v17 = vadd.f32 %v511_v11, %v510_v3 }
 0x125   : > { %v334_v18 = vrot.slane %v333_v14, 1  ;;  %v395_v19 = vrot.slane %v394_v15, 1  ;;  %v452_v20 = vrot.slane %v451_v16, 4  ;;  %v513_v21 = vrot.slane %v512_v17, 4 }
 0x127   : > { %v335_v22 = vadd.f32 %v334_v18, %v333_v14  ;;  %v396_v23 = vadd.f32 %v395_v19, %v394_v15  ;;  %v453_v24 = vadd.f32 %v452_v20, %v451_v16  ;;  %v514_v25 = vadd.f32 %v513_v21, %v512_v17 }
 0x129   : > { %336 = vst [vmem:[%s211_s13] sm:$0x1] %v335_v22  ;;  %397 = vst [vmem:[%s211_s13 + $0x1] sm:$0x1] %v396_v23  ;;  %v454_v26 = vrot.slane %v453_v24, 2  ;;  %v515_v27 = vrot.slane %v514_v25, 2 }
 0x12b   : > { %v455_v28 = vadd.f32 %v454_v26, %v453_v24  ;;  %v516_v29 = vadd.f32 %v515_v27, %v514_v25 }
 0x12d   : > { %v456_v30 = vrot.slane %v455_v28, 1  ;;  %v517_v31 = vrot.slane %v516_v29, 1 }
 0x12f   : > { %v457_v32 = vadd.f32 %v456_v30, %v455_v28  ;;  %v518_v33 = vadd.f32 %v517_v31, %v516_v29 }
 0x131   : > { %458 = vst [vmem:[%s211_s13 + $0x2] sm:$0x1] %v457_v32  ;;  %519 = vst [vmem:[%s211_s13 + $0x3] sm:$0x1] %v518_v33 }
 0x132   : > { %751 = shalt.err (!%p748_p2)
}
 0x133   : > { %s752_s6 = scalar_lea.hbm %s932_s27, 64  ;;  %s756_s9 = scalar_lea.hbm %s980_s4, 128 }
 0x134   : > { %p753_p3 = scmp.ne.s32.totalorder %s932_s27, %s752_s6  ;;  %p757_p8 = scmp.lt.u32.totalorder %s932_s27, %s980_s4 }
 0x135   : > { %p758_p11 = scmp.lt.u32.totalorder %s756_s9, %s752_s6  ;;  %p760_p10 = scmp.lt.u32.totalorder %s752_s6, %s932_s27 }
 0x136   : > { %p754_p4 = pnand %p753_p3, %p873_p5 }
 0x137   : > { %p759_p9 = por %p758_p11, %p757_p8 }
 0x138   : > { %p755_p7 = pneg %p754_p4 }
 0x139   : > { %p761_p12 = por %p760_p10, %p759_p9 }
 0x13b   : > { %p762_p13 = pnand %p761_p12, %p755_p7 }
 0x13d   : > { %765 = shalt.err (!%p762_p13)
}
 0x13e   : > { %671 = dma.vmem_to_hbm [thread:$0]  (%p873_p5), %s934_s20, 64, %s932_s27, %s521_s28  }
 0x13f PF: > { %p683_p0 = scmp.ge.s32.totalorder %s804_s18, 2  ;;  %s546_s12 = sand.u32 1, %s792_s15  }
 0x140   : > { %s547_s13 = scalar_lea.sflag [#allocation3], %s546_s12 }
 0x141   : > { %p678_p1 = pnand %p683_p0, %p877_p6 }
 0x143   : > { %787 = dma.done.wait (!%p678_p1), %s547_s13, 64  }
 0x144   : > { %789 = vsyncadd (!%p678_p1), %s547_s13, 4294967232  ;;  %p15_p2 = scmp.ge.s32.totalorder %s860_s21, 4   ;;  %s984_s15 = smov %s796_s16 }
 0x145   : > { %s985_s16 = smov %s800_s17  ;;  %s986_s17 = smov %s871_s24 }
 0x146   : > { %s987_s18 = smov %s860_s21  ;;  %17 = sbr.rel (!%p15_p2) target bundleno = 4 (0x4), region = 79 }
 0x14d   :  { %552 = vsyncpa [#allocation3], 1 }
 0x14e   :  { %554 = vsyncpa [#allocation3 + $0x1], 1 }
 0x14f   :  { %555 = vsyncpa [#allocation4], 1 }
 0x150   :  { %557 = vsyncpa [#allocation4 + $0x1], 1 }

</bundles_post_ra>
